<compile_context>
chip_gen: v5e
topology: v5e:2x2
jax: 0.10.0
libtpu: 0.0.40
codegen_flags: <defaults>
</compile_context>

<pallas_src>
import functools

import jax
import jax.numpy as jnp
from jax.experimental import pallas as pl
from jax.experimental.pallas import tpu as pltpu

_MIB = 1024 * 1024


def _se_block_kernel(x_ref, wd_ref, bd_ref, wu_ref, bu_ref, o_ref, *,
                     inv_hw, use_mxu):
    # x_ref / o_ref : (TB, C, HWp) in the model's native dtype (bf16 or f32)
    # VPU path : wd_ref (Cint, C) f32 ; wu_ref (C, Cint) f32
    # MXU path : wd_ref (C, Cint) f32 ; wu_ref (Cint, C) f32
    # bd_ref : (1, Cint) f32 ; bu_ref : (1, C) f32
    x = x_ref[...]

    # Global average pool over the (lane-dense) spatial axis.  The f32 cast is
    # consumed by the reduce, so no full-block f32 temp is kept live in VMEM.
    pooled = jnp.sum(x.astype(jnp.float32), axis=-1) * inv_hw            # (TB, C)

    if use_mxu:
        # Production channel counts: two tiny matmuls on the otherwise-idle MXU.
        z = jnp.dot(pooled, wd_ref[...], preferred_element_type=jnp.float32)
        z = jnp.maximum(z + bd_ref[...], 0.0)                            # (TB, Cint)
        u = jnp.dot(z, wu_ref[...], preferred_element_type=jnp.float32)  # (TB, C)
    else:
        # Tiny C (demo sizes): VPU broadcast-multiply + lane reductions.
        z = jnp.sum(pooled[:, None, :] * wd_ref[...][None, :, :], axis=-1)
        z = jnp.maximum(z + bd_ref[...], 0.0)                            # (TB, Cint)
        u = jnp.sum(z[:, None, :] * wu_ref[...][None, :, :], axis=-1)    # (TB, C)

    scale = jax.nn.sigmoid(u + bu_ref[...])                              # (TB, C) f32

    # Dominant pass (read + per-channel scale + write) in the native dtype:
    # halves VPU / load-store bytes for bf16 I/O on v6e/v7x.
    o_ref[...] = x * scale.astype(o_ref.dtype)[:, :, None]


def _vmem_capacity_bytes():
    """Per-core VMEM capacity (64 MiB on v7x, 128 MiB on v5e/v6e)."""
    try:
        cap = getattr(pltpu.get_tpu_info(), "vmem_capacity_bytes", None)
        if cap:
            return int(cap)
    except Exception:
        pass
    return 64 * _MIB  # conservative fallback (v7x per-TC VMEM)


def _choose_batch_tile(n, slab_bytes, target_bytes, prefer_even_steps):
    """Largest divisor TB of n with TB*slab <= target (TB=1 always allowed).
    On dual-TC chips (v7x) prefer an even grid-step count so both TensorCores
    get equal work under dimension_semantics=("parallel",)."""
    best, best_even = 1, None
    for tb in range(1, n + 1):
        if n % tb:
            continue
        if tb > 1 and tb * slab_bytes > target_bytes:
            continue
        best = max(best, tb)
        if prefer_even_steps and (n // tb) % 2 == 0:
            best_even = tb if best_even is None else max(best_even, tb)
    return best_even if best_even is not None else best


def se_block(x_nchw, w_down, b_down, w_up, b_up):
    """SEBlock forward.  x_nchw: (N, C, H, W), any float dtype (kept for I/O).
    Weights use nn.Conv2d 1x1 shapes: w_down (Cint, C, 1, 1), b_down (Cint,),
    w_up (C, Cint, 1, 1), b_up (C,)."""
    N, C, H, W = x_nchw.shape
    assert H == W, "SEBlock uses avg_pool2d(kernel_size=W); expects square input"
    Cint = w_down.shape[0]
    HW = H * W

    # Lane-dense last dim: pad HW up to a multiple of 128 when needed (real
    # RepVGG stages have HW = 3136/784/196/49, none divisible by 128).  Zero
    # pads do not change the pooled mean (we divide by the true HW) and the
    # padded columns are sliced off after the kernel.
    HWp = ((HW + 127) // 128) * 128
    x = x_nchw.reshape(N, C, HW)
    if HWp != HW:
        x = jnp.pad(x, ((0, 0), (0, 0), (0, HWp - HW)))

    # Use the (idle) MXU for squeeze/excite at production channel counts; keep
    # the VPU broadcast+reduce path for tiny C (demo sizes).
    use_mxu = (C >= 128) and (Cint >= 8)
    if use_mxu:
        wd = w_down.reshape(Cint, C).T.astype(jnp.float32)   # (C, Cint)
        wu = w_up.reshape(C, Cint).T.astype(jnp.float32)     # (Cint, C)
    else:
        wd = w_down.reshape(Cint, C).astype(jnp.float32)     # (Cint, C)
        wu = w_up.reshape(C, Cint).astype(jnp.float32)       # (C, Cint)
    bd = b_down.reshape(1, Cint).astype(jnp.float32)
    bu = b_up.reshape(1, C).astype(jnp.float32)

    # Generation-aware tiling / VMEM budget.
    vmem_cap = _vmem_capacity_bytes()
    target_block = min(16 * _MIB, vmem_cap // 10)   # ~6 MiB v7x, ~13 MiB v5e/v6e
    dual_tc = vmem_cap <= 64 * _MIB                  # v7x: 2 TensorCores / chip
    slab_bytes = C * HWp * x.dtype.itemsize
    tb = _choose_batch_tile(N, slab_bytes, target_block,
                            prefer_even_steps=dual_tc and N > 1)
    block_bytes = tb * slab_bytes
    weight_bytes = sum(int(a.size) * 4 for a in (wd, bd, wu, bu))
    # Double-buffered in + out (4x block) + f32 temps + weights, with headroom;
    # never ask for more than ~85% of the physical per-core VMEM.
    vmem_limit = int(min(0.85 * vmem_cap,
                         max(32 * _MIB, 6 * block_bytes + weight_bytes + 2 * _MIB)))

    kernel = functools.partial(_se_block_kernel, inv_hw=1.0 / HW, use_mxu=use_mxu)

    cost = pl.CostEstimate(
        flops=2 * N * C * HWp + 4 * N * C * Cint,
        transcendentals=N * C,
        bytes_accessed=2 * N * C * HWp * x.dtype.itemsize + weight_bytes)

    out = pl.pallas_call(
        kernel,
        out_shape=jax.ShapeDtypeStruct((N, C, HWp), x.dtype),
        grid_spec=pl.GridSpec(
            grid=(N // tb,),
            in_specs=[
                pl.BlockSpec((tb, C, HWp), lambda b: (b, 0, 0)),
                pl.BlockSpec(wd.shape, lambda b: (0, 0)),
                pl.BlockSpec(bd.shape, lambda b: (0, 0)),
                pl.BlockSpec(wu.shape, lambda b: (0, 0)),
                pl.BlockSpec(bu.shape, lambda b: (0, 0)),
            ],
            out_specs=pl.BlockSpec((tb, C, HWp), lambda b: (b, 0, 0)),
        ),
        compiler_params=pltpu.CompilerParams(
            dimension_semantics=("parallel",),
            vmem_limit_bytes=vmem_limit),
        cost_estimate=cost,
    )(x, wd, bd, wu, bu)

    if HWp != HW:
        out = out[:, :, :HW]
    return out.reshape(N, C, H, W)


def _reference(x, w_down, b_down, w_up, b_up):
    # Pure-JAX reference of the PyTorch SEBlock forward (f32 math, exact
    # broadcast+sum so the check is not limited by MXU default precision).
    N, C, H, W = x.shape
    Cint = w_down.shape[0]
    wd = w_down.reshape(Cint, C).astype(jnp.float32)
    wu = w_up.reshape(C, Cint).astype(jnp.float32)
    xf = x.astype(jnp.float32)
    pooled = jnp.mean(xf, axis=(2, 3))                                        # (N, C)
    z = jax.nn.relu(jnp.sum(pooled[:, None, :] * wd[None], axis=-1) + b_down[None, :])
    s = jax.nn.sigmoid(jnp.sum(z[:, None, :] * wu[None], axis=-1) + b_up[None, :])
    return xf * s[:, :, None, None]


def _make_inputs(key, N, C, H, W):
    Cint = C // 8  # SEBlock: internal_neurons = input_channels // 8
    kx, kwd, kbd, kwu, kbu = jax.random.split(key, 5)
    x = jax.random.normal(kx, (N, C, H, W), dtype=jnp.float32)
    w_down = jax.random.normal(kwd, (Cint, C, 1, 1), dtype=jnp.float32) * 0.1
    b_down = jax.random.normal(kbd, (Cint,), dtype=jnp.float32) * 0.1
    w_up = jax.random.normal(kwu, (C, Cint, 1, 1), dtype=jnp.float32) * 0.1
    b_up = jax.random.normal(kbu, (C,), dtype=jnp.float32) * 0.1
    return x, w_down, b_down, w_up, b_up


if __name__ == "__main__":
    key = jax.random.PRNGKey(0)
    k1, k2 = jax.random.split(key)

    # 1) f32, small channels (C=32 -> Cint=4): VPU squeeze/excite path,
    #    lane-dense spatial size (HW = 256).
    x, wd_, bd_, wu_, bu_ = _make_inputs(k1, 2, 32, 16, 16)
    out = jax.block_until_ready(se_block(x, wd_, bd_, wu_, bu_))
    ref = _reference(x, wd_, bd_, wu_, bu_)
    assert out.dtype == jnp.float32
    assert jnp.allclose(out, ref, atol=1e-5, rtol=1e-5), "f32 (VPU path) mismatch"

    # 2) bf16 I/O on the same problem: native-dtype DMA + bf16 scale pass.
    x_bf = x.astype(jnp.bfloat16)
    out_bf = jax.block_until_ready(se_block(x_bf, wd_, bd_, wu_, bu_))
    ref_bf = _reference(x_bf, wd_, bd_, wu_, bu_)
    assert out_bf.dtype == jnp.bfloat16
    assert jnp.allclose(out_bf.astype(jnp.float32), ref_bf, atol=2e-2, rtol=2e-2), \
        "bf16 mismatch"

    # 3) Production-ish channels (C=128 -> Cint=16): MXU squeeze/excite path
    #    and HW=64 (not a multiple of 128) exercising the lane-padding path.
    x3, wd3, bd3, wu3, bu3 = _make_inputs(k2, 2, 128, 8, 8)
    out3 = jax.block_until_ready(se_block(x3, wd3, bd3, wu3, bu3))
    ref3 = _reference(x3, wd3, bd3, wu3, bu3)
    assert jnp.allclose(out3, ref3, atol=2e-3, rtol=2e-3), "f32 (MXU path) mismatch"

    print("KERNEL_OK")
</pallas_src>

<mosaic_0001>
module attributes {stable_mosaic.version = 11 : i64} {
  func.func @_se_block_kernel(%arg0: i32, %arg1: memref<1x32x256xf32, #tpu.memory_space<vmem>>, %arg2: memref<4x32xf32, #tpu.memory_space<vmem>>, %arg3: memref<1x4xf32, #tpu.memory_space<vmem>>, %arg4: memref<32x4xf32, #tpu.memory_space<vmem>>, %arg5: memref<1x32xf32, #tpu.memory_space<vmem>>, %arg6: memref<1x32x256xf32, #tpu.memory_space<vmem>>) attributes {dimension_semantics = [#tpu.dimension_semantics<parallel>], iteration_bounds = array<i64: 2>, scalar_prefetch = 0 : i64, scratch_operands = 0 : i64, tpu.core_type = #tpu.core_type<tc>, window_params = [{transform_indices = @transform_0, window_bounds = array<i64: 1, 32, 256>}, {pipeline_mode = #tpu.pipeline_mode<synchronous>, transform_indices = @transform_1, window_bounds = array<i64: 4, 32>}, {pipeline_mode = #tpu.pipeline_mode<synchronous>, transform_indices = @transform_2, window_bounds = array<i64: 1, 4>}, {pipeline_mode = #tpu.pipeline_mode<synchronous>, transform_indices = @transform_3, window_bounds = array<i64: 32, 4>}, {pipeline_mode = #tpu.pipeline_mode<synchronous>, transform_indices = @transform_4, window_bounds = array<i64: 1, 32>}, {transform_indices = @transform_5, window_bounds = array<i64: 1, 32, 256>}]} {
    %c0 = arith.constant 0 : index
    %c0_0 = arith.constant 0 : index
    %c0_1 = arith.constant 0 : index
    %0 = vector.load %arg1[%c0, %c0_0, %c0_1] : memref<1x32x256xf32, #tpu.memory_space<vmem>>, vector<1x32x256xf32>
    %cst = arith.constant dense<0.000000e+00> : vector<1x32xf32>
    %1 = vector.multi_reduction <add>, %0, %cst [2] : vector<1x32x256xf32> to vector<1x32xf32>
    %cst_2 = arith.constant 3.906250e-03 : f32
    %2 = vector.broadcast %cst_2 : f32 to vector<1x32xf32>
    %3 = arith.mulf %1, %2 : vector<1x32xf32>
    %4 = vector.shape_cast %3 : vector<1x32xf32> to vector<1x1x32xf32>
    %c0_3 = arith.constant 0 : index
    %c0_4 = arith.constant 0 : index
    %5 = vector.load %arg2[%c0_3, %c0_4] : memref<4x32xf32, #tpu.memory_space<vmem>>, vector<4x32xf32>
    %6 = vector.shape_cast %5 : vector<4x32xf32> to vector<1x4x32xf32>
    %7 = vector.broadcast %4 : vector<1x1x32xf32> to vector<1x4x32xf32>
    %8 = arith.mulf %7, %6 : vector<1x4x32xf32>
    %cst_5 = arith.constant dense<0.000000e+00> : vector<1x4xf32>
    %9 = vector.multi_reduction <add>, %8, %cst_5 [2] : vector<1x4x32xf32> to vector<1x4xf32>
    %c0_6 = arith.constant 0 : index
    %c0_7 = arith.constant 0 : index
    %10 = vector.load %arg3[%c0_6, %c0_7] : memref<1x4xf32, #tpu.memory_space<vmem>>, vector<1x4xf32>
    %11 = arith.addf %9, %10 : vector<1x4xf32>
    %cst_8 = arith.constant 0.000000e+00 : f32
    %12 = vector.broadcast %cst_8 : f32 to vector<1x4xf32>
    %13 = arith.maximumf %11, %12 : vector<1x4xf32>
    %14 = vector.shape_cast %13 : vector<1x4xf32> to vector<1x1x4xf32>
    %c0_9 = arith.constant 0 : index
    %c0_10 = arith.constant 0 : index
    %15 = vector.load %arg4[%c0_9, %c0_10] : memref<32x4xf32, #tpu.memory_space<vmem>>, vector<32x4xf32>
    %16 = vector.shape_cast %15 : vector<32x4xf32> to vector<1x32x4xf32>
    %17 = vector.broadcast %14 : vector<1x1x4xf32> to vector<1x32x4xf32>
    %18 = arith.mulf %17, %16 : vector<1x32x4xf32>
    %cst_11 = arith.constant dense<0.000000e+00> : vector<1x32xf32>
    %19 = vector.multi_reduction <add>, %18, %cst_11 [2] : vector<1x32x4xf32> to vector<1x32xf32>
    %c0_12 = arith.constant 0 : index
    %c0_13 = arith.constant 0 : index
    %20 = vector.load %arg5[%c0_12, %c0_13] : memref<1x32xf32, #tpu.memory_space<vmem>>, vector<1x32xf32>
    %21 = arith.addf %19, %20 : vector<1x32xf32>
    %22 = arith.negf %21 : vector<1x32xf32>
    %23 = math.exp %22 : vector<1x32xf32>
    %cst_14 = arith.constant 1.000000e+00 : f32
    %24 = vector.broadcast %cst_14 : f32 to vector<1x32xf32>
    %25 = arith.addf %24, %23 : vector<1x32xf32>
    %26 = arith.divf %24, %25 : vector<1x32xf32>
    %27 = vector.shape_cast %26 : vector<1x32xf32> to vector<1x32x1xf32>
    %28 = vector.broadcast %27 : vector<1x32x1xf32> to vector<1x32x256xf32>
    %29 = arith.mulf %0, %28 : vector<1x32x256xf32>
    %c0_15 = arith.constant 0 : index
    %c0_16 = arith.constant 0 : index
    %c0_17 = arith.constant 0 : index
    %30 = vector.load %arg6[%c0_15, %c0_16, %c0_17] : memref<1x32x256xf32, #tpu.memory_space<vmem>>, vector<1x32x256xf32>
    tpu.vector_store %arg6[%c0_15, %c0_16, %c0_17], %29 {strides = array<i32>} : memref<1x32x256xf32, #tpu.memory_space<vmem>>, vector<1x32x256xf32>,
    return
  }
  func.func @transform_0(%arg0: i32) -> (i32, i32, i32) {
    %c0_i32 = arith.constant 0 : i32
    %c0_i32_0 = arith.constant 0 : i32
    %c0_i32_1 = arith.constant 0 : i32
    return %arg0, %c0_i32, %c0_i32_0 : i32, i32, i32
  }
  func.func @transform_1(%arg0: i32) -> (i32, i32) {
    %c0_i32 = arith.constant 0 : i32
    %c0_i32_0 = arith.constant 0 : i32
    %c0_i32_1 = arith.constant 0 : i32
    return %c0_i32, %c0_i32_0 : i32, i32
  }
  func.func @transform_2(%arg0: i32) -> (i32, i32) {
    %c0_i32 = arith.constant 0 : i32
    %c0_i32_0 = arith.constant 0 : i32
    %c0_i32_1 = arith.constant 0 : i32
    return %c0_i32, %c0_i32_0 : i32, i32
  }
  func.func @transform_3(%arg0: i32) -> (i32, i32) {
    %c0_i32 = arith.constant 0 : i32
    %c0_i32_0 = arith.constant 0 : i32
    %c0_i32_1 = arith.constant 0 : i32
    return %c0_i32, %c0_i32_0 : i32, i32
  }
  func.func @transform_4(%arg0: i32) -> (i32, i32) {
    %c0_i32 = arith.constant 0 : i32
    %c0_i32_0 = arith.constant 0 : i32
    %c0_i32_1 = arith.constant 0 : i32
    return %c0_i32, %c0_i32_0 : i32, i32
  }
  func.func @transform_5(%arg0: i32) -> (i32, i32, i32) {
    %c0_i32 = arith.constant 0 : i32
    %c0_i32_0 = arith.constant 0 : i32
    %c0_i32_1 = arith.constant 0 : i32
    return %arg0, %c0_i32, %c0_i32_0 : i32, i32, i32
  }
}

</mosaic_0001>

<bundles_post_ra>
// kernel: tpu_custom_call.1
= control target key start
LH: loop header
LB: loop body
LE: loop exit
PB: predicated region body
PF: predicated region fallthrough
CT: control target
= control target key end

     0   :  { %10 = vsyncpa [#allocation3], 0  ;;  %s1976_s0 = inlined_call_operand.hbm [shape: f32[2,32,256], index: 0, kind: input, shape index: {}]   ;;  %s1977_s1 = inlined_call_operand.vmem [shape: f32[4,32], index: 1, kind: input, shape index: {}]   ;;  %s1978_s2 = inlined_call_operand.vmem [shape: f32[1,4], index: 2, kind: input, shape index: {}]   ;;  %s1979_s3 = inlined_call_operand.vmem [shape: f32[32,4], index: 3, kind: input, shape index: {}]   ;;  %s1980_s4 = inlined_call_operand.vmem [shape: f32[1,32], index: 4, kind: input, shape index: {}]   ;;  %s1981_s5 = inlined_call_operand.hbm [shape: f32[2,32,256], index: 5, kind: output, shape index: {}]  }
   0x1   :  { %12 = vsyncpa [#allocation3 + $0x1], 0 }
   0x2   :  { %13 = vsyncpa [#allocation4], 0 }
   0x3   :  { %15 = vsyncpa [#allocation4 + $0x1], 0  ;;  %s1528_s18 = smov 0   ;;  %s1530_s19 = smov 0  }
   0x4   :  { %s1532_s20 = smov 0   ;;  %s1534_s21 = smov 0  }
   0x5 LB: > { %s1549_s22 = sadd.s32 4294967295, %s1491_s21   ;;  %s1267_s23 = sadd.s32 4294967294, %s1491_s21   ;;  %s1491_s21 = sphi %s1534_s21, %s1991_s21   ;;  %s1487_s20 = sphi %s1532_s20, %s1990_s20   ;;  %s1483_s19 = sphi %s1530_s19, %s1989_s19   ;;  %s1479_s18 = sphi %s1528_s18, %s1988_s18  }
   0x6   : > { %s1553_s24 = sadd.s32 1, %s1491_s21   ;;  %s28_s25 = sadd.s32 1, %s1487_s20 }
   0x7   : > { %s25_s26 = ssub.s32 %s1491_s21, %s1553_s24  ;;  %p35_p0 = scmp.ne.s32.totalorder %s1487_s20, %s1483_s19 }
   0x8   : > { %p26_p1 = scmp.eq.s32.totalorder %s25_s26, 0  ;;  %p36_p2 = scmp.eq.s32.totalorder %s1491_s21, 0 }
   0x9   : > { %p41_p3 = scmp.ne.s32.totalorder %s1483_s19, %s1479_s18  ;;  %p42_p4 = scmp.eq.s32.totalorder %s1549_s22, 0 }
   0xa   : > { %s1565_s27 = scalar_select %p26_p1, %s1487_s20, %s28_s25  }
   0xb   : > { %p1567_p5 = por %p36_p2, %p35_p0  ;;  %p1571_p6 = por %p42_p4, %p41_p3 }
   0xc   : > { %p149_p7 = scmp.eq.s32.totalorder %s1549_s22, 1  ;;  %p155_p8 = scmp.eq.s32.totalorder %s1267_s23, 1 }
   0xd   : > { %p1299_p10 = scmp.lt.s32.totalorder %s1491_s21, 2  ;;  %s187_s7 = sand.u32 1, %s1487_s20  }
   0xe   : > { %p1578_p11 = por %p149_p7, %p35_p0  ;;  %p1582_p12 = por %p155_p8, %p41_p3 }
   0xf   : > { %s1285_s8 = sshll.u32 %s1491_s21, 6  ;;  %s1270_s9 = sshll.u32 %s187_s7, 6 }
  0x10   : > { %s196_s12 = scalar_lea.hbm %s1976_s0, %s1285_s8  ;;  %s191_s14 = scalar_lea.vmem [#allocation2], %s1270_s9 }
  0x11   : > { %s197_s13 = sshll.u32 %s196_s12, 4  ;;  %s199_s15 = sshll.u32 %s191_s14, 4  ;;  %s198_s13 = int_to_ptr.hbm [resolvable:$true] %s197_s13  ;;  %s200_s15 = int_to_ptr.vmem [resolvable:$true] %s199_s15 }
  0x12   : > { %p1593_p13 = pnand %p1299_p10, %p1567_p5  ;;  %p1273_p0 = scmp.ge.s32.totalorder %s1491_s21, 1 }
  0x13   : > { %p207_p1 = scmp.lt.s32.totalorder %s1491_s21, 3  ;;  %s188_s17 = scalar_lea.sflag [#allocation3], %s187_s7 }
  0x14   : > { %s1395_s23 = sshra.s32 %s198_s13, 4  ;;  %p1399_p3 = pneg %p1593_p13  ;;  %s1396_s23 = int_to_ptr.hbm [resolvable:$true] %s1395_s23 }
  0x15   : > { %s1397_s25 = scalar_lea.hbm %s1396_s23, 64  ;;  %s1402_s28 = scalar_lea.hbm %s1976_s0, 128 }
  0x16   : > { %p1398_p2 = scmp.ne.s32.totalorder %s1396_s23, %s1397_s25  ;;  %p1403_p5 = scmp.lt.s32.totalorder %s1396_s23, %s1976_s0 }
  0x17   : > { %p1404_p8 = scmp.lt.s32.totalorder %s1402_s28, %s1397_s25 }
  0x18   : > { %p1400_p4 = pnand %p1399_p3, %p1398_p2 }
  0x19   : > { %p1405_p10 = por %p1404_p8, %p1403_p5 }
  0x1a   : > { %p1401_p7 = pneg %p1400_p4 }
  0x1c   : > { %p1406_p9 = pnand %p1405_p10, %p1401_p7 }
  0x1e   : > { %1409 = shalt.err (!%p1406_p9)
}
  0x1f   : > { %s1493_s7 = smov 256   ;;  %s1494_s11 = smov 16  }
  0x20   : > { %1294 = dma.hbm_to_vmem [thread:$0]  (!%p1593_p13), %s198_s13, 1024, %s200_s15, %s188_s17, %s1493_s7, %s1493_s7, %s1494_s11  }
  0x21   : > { %p208_p2 = pnand %p1273_p0, %p207_p1 }
  0x22   : > { %s1614_s12 = sand.u32 (!%p208_p2), 1, %s1483_s19  }
  0x23   : > { %211 = sbr.rel (%p208_p2) target bundleno = 994 (0x3e2), region = 40  ;;  %s1274_s14 = sshll.u32 (!%p208_p2), %s1614_s12, 6 }
  0x24   : > { %s214_s23 = scalar_lea.sflag (!%p208_p2), [#allocation3], %s1614_s12  ;;  %s1620_s25 = scalar_lea.vmem (!%p208_p2), [#allocation2], %s1274_s14 }
  0x28   : > { %1470 = dma.done.wait (%p1571_p6), %s214_s23, 1024  }
  0x29   : > { %1472 = vsyncadd (%p1571_p6), %s214_s23, 4294966272  ;;  %v272_v0 = vlaneseq  ;;  %v249_v4 = vld [vmem:[%s1620_s25 + $0x20] sm:$0xff]  ;;  %v250_v5 = vld [vmem:[%s1620_s25 + $0x28] sm:$0xff]  ;;  %v1495_v31 = vmov 0   ;;  %vm472_vm0 = vcmask 130112   ;;  %vm476_vm1 = vcmask 195712  }
  0x2a   : > { %v245_v6 = vld [vmem:[%s1620_s25] sm:$0xff]  ;;  %v259_v7 = vadd.f32 %v250_v5, %v249_v4  ;;  %v246_v8 = vld [vmem:[%s1620_s25 + $0x8] sm:$0xff]  ;;  %v251_v12 = vld [vmem:[%s1620_s25 + $0x30] sm:$0xff]  ;;  %vm480_vm2 = vcmask 261312   ;;  %vm503_vm3 = vcmask 1041409   ;;  %vm505_vm4 = vcmask 1042434  }
  0x2b   : > { %v1627_v1 = vshrl.u32 %v272_v0, 7  ;;  %v269_v9 = vld [vmem:[%s1977_s1] sm:$0xf]  ;;  %v253_v10 = vadd.f32 %v246_v8, %v245_v6  ;;  %v252_v13 = vld [vmem:[%s1620_s25 + $0x38] sm:$0xff]  ;;  %v247_v14 = vld [vmem:[%s1620_s25 + $0x10] sm:$0xff]  ;;  %vm507_vm5 = vcmask 1043459  }
  0x2c   : > { %v271_v11 = vperm.slane %v269_v9, 0  ;;  %260 = vadd.xlane.f32.xlu1 %v259_v7  ;;  %v248_v15 = vld [vmem:[%s1620_s25 + $0x18] sm:$0xff]  ;;  %v262_v16 = vadd.f32 %v252_v13, %v251_v12  ;;  %v296_v19 = vperm.slane %v269_v9, 1  ;;  %v321_v20 = vperm.slane %v269_v9, 2  ;;  %v1369_v21 = vld [vmem:[%s1978_s2] ss:$0 sm:$0xff] }
  0x2d   : > { %1338 = vset.pattern.permute.xlu2 %v1627_v1  ;;  %v1631_v2 = vadd.s32 16, %v1627_v1  ;;  %v1634_v3 = vadd.s32 24, %v1627_v1  ;;  %254 = vadd.xlane.f32.xlu0 %v253_v10  ;;  %v256_v17 = vadd.f32 %v248_v15, %v247_v14  ;;  %v1650_v18 = vadd.s32 8, %v1627_v1  ;;  %v1666_v22 = vld [vmem:[%s1979_s3] sm:$0xff]  ;;  %v1676_v27 = vld [vmem:[%s1979_s3 + $0x8] sm:$0xff]  ;;  %v1688_v33 = vld [vmem:[%s1979_s3 + $0x10] sm:$0xff] }
  0x2e   : > { %v548_v23 = vperm.slane %v1666_v22, 2  ;;  %v562_v24 = vperm.slane %v1666_v22, 4  ;;  %v346_v25 = vperm.slane %v269_v9, 3  ;;  %v576_v26 = vperm.slane %v1666_v22, 6  ;;  %v1699_v42 = vld [vmem:[%s1979_s3 + $0x18] sm:$0xff]  ;;  %s244_s13 = scalar_lea.vmem [#allocation5], %s1274_s14 }
  0x2f   : > { %1340 = vset.pattern.permute.xlu0 %v1631_v2  ;;  %1341 = vset.pattern.permute.xlu1 %v1634_v3  ;;  %v597_v28 = vperm.slane %v1676_v27, 1  ;;  %v611_v29 = vperm.slane %v1676_v27, 3  ;;  %v625_v30 = vperm.slane %v1676_v27, 5  ;;  %v646_v34 = vperm.slane %v1688_v33, 0  ;;  %s1286_s15 = sshll.u32 %s1549_s22, 6  ;;  %s1191_s26 = sshll.u32 %s244_s13, 4  ;;  %s1192_s26 = int_to_ptr.vmem [resolvable:$true] %s1191_s26 }
  0x30   : > { %v667_v37 = vperm.slane %v1688_v33, 3  ;;  %v688_v41 = vperm.slane %v1688_v33, 6  ;;  %v709_v44 = vperm.slane %v1699_v42, 1  ;;  %v730_v49 = vperm.slane %v1699_v42, 4  ;;  %s1190_s17 = scalar_lea.hbm %s1981_s5, %s1286_s15  ;;  %s1179_s28 = scalar_lea.sflag [#allocation4], %s1614_s12 }
  0x31   : > { %v534_v50 = vperm.slane %v1666_v22, 0  ;;  %v751_v52 = vperm.slane %v1699_v42, 7  ;;  %v541_v54 = vperm.slane %v1666_v22, 1  ;;  %vm510_vm6 = vcmask 257024   ;;  %s1193_s8 = sshll.u32 %s1190_s17, 4  ;;  %s1445_s11 = scalar_lea.hbm %s1981_s5, 128  ;;  %s1194_s8 = int_to_ptr.hbm [resolvable:$true] %s1193_s8 }
  0x32   : > { %vm985_vm7 = vcmask 1044484   ;;  %vm987_vm8 = vcmask 1045509   ;;  %vm989_vm9 = vcmask 1046534   ;;  %vm991_vm10 = vcmask 1047559   ;;  %s1439_s22 = sshra.s32 %s1194_s8, 4  ;;  %s1440_s22 = int_to_ptr.hbm [resolvable:$true] %s1439_s22 }
  0x33   : > { %vm1018_vm11 = vcmask 31744   ;;  %s1441_s9 = scalar_lea.hbm %s1440_s22, 64  ;;  %p1446_p0 = scmp.lt.s32.totalorder %s1440_s22, %s1981_s5 }
  0x34   : > { %263 = vadd.xlane.f32.xlu1 %v262_v16  ;;  %p1442_p6 = scmp.ne.s32.totalorder %s1440_s22, %s1441_s9  ;;  %p1447_p1 = scmp.lt.s32.totalorder %s1445_s11, %s1441_s9 }
  0x35   : > { %276 = vperm.xlu2 %1338, %v271_v11   ;;  %257 = vadd.xlane.f32.xlu0 %v256_v17 }
  0x36   : > { %p1443_p9 = pnand %p1442_p6, %p1578_p11  ;;  %p1448_p3 = por %p1447_p1, %p1446_p0 }
  0x38   : > { %p1444_p13 = pneg %p1443_p9 }
  0x3a   : > { %p1449_p4 = pnand %p1448_p3, %p1444_p13 }
  0x3d   : > { %1339 = vset.pattern.permute.xlu2 %v1650_v18 }
  0x45   : > { %282 = vperm.xlu2 %1339, %v271_v11  }
  0x49   : > { %288 = vperm.xlu0 %1340, %v271_v11  }
  0x4d   : > { %1342 = vset.pattern.permute.xlu2 %v1627_v1  ;;  %294 = vperm.xlu1 %1341, %v271_v11  }
  0x51   : > { %1349 = vset.pattern.permute.xlu0 %v1634_v3 }
  0x55   : > { %301 = vperm.xlu2 %1342, %v296_v19   ;;  %1346 = vset.pattern.permute.xlu1 %v1627_v1 }
  0x59   : > { %344 = vperm.xlu0 %1349, %v321_v20  }
  0x5d   : > { %1343 = vset.pattern.permute.xlu2 %v1650_v18  ;;  %326 = vperm.xlu1 %1346, %v321_v20  }
  0x61   : > { %1354 = vset.pattern.permute.xlu0 %v1627_v1 }
  0x65   : > { %307 = vperm.xlu2 %1343, %v296_v19   ;;  %1348 = vset.pattern.permute.xlu1 %v1631_v2 }
  0x69   : > { %521 = vperm.xlu0 %1354, %v1369_v21  }
  0x6d   : > { %1344 = vset.pattern.permute.xlu2 %v1631_v2  ;;  %338 = vperm.xlu1 %1348, %v321_v20  }
  0x71   : > { %553 = vperm.xlu0 %1354, %v548_v23   ;;  %v639_v23 = vperm.slane %v1676_v27, 7 }
  0x75   : > { %313 = vperm.xlu2 %1344, %v296_v19   ;;  %1351 = vset.pattern.permute.xlu1 %v1650_v18 }
  0x79   : > { %567 = vperm.xlu0 %1354, %v562_v24  }
  0x7d   : > { %1345 = vset.pattern.permute.xlu2 %v1634_v3  ;;  %357 = vperm.xlu1 %1351, %v346_v25  }
  0x81   : > { %581 = vperm.xlu0 %1354, %v576_v26  }
  0x85   : > { %319 = vperm.xlu2 %1345, %v296_v19   ;;  %1353 = vset.pattern.permute.xlu1 %v1634_v3 }
  0x89   : > { %602 = vperm.xlu0 %1354, %v597_v28  }
  0x8d   : > { %1347 = vset.pattern.permute.xlu2 %v1650_v18  ;;  %369 = vperm.xlu1 %1353, %v346_v25  }
  0x8f   : > { %v277_v32 = vpop.permute.xlu2 %276 }
  0x91   : > { %616 = vperm.xlu0 %1354, %v611_v29   ;;  %v660_v29 = vperm.slane %v1688_v33, 2 }
  0x95   : > { %332 = vperm.xlu2 %1347, %v321_v20   ;;  %1356 = vset.pattern.permute.xlu1 %v1495_v31  ;;  %v590_v20 = vperm.slane %v1676_v27, 0 }
  0x99   : > { %630 = vperm.xlu0 %1354, %v625_v30  }
  0x9d   : > { %1350 = vset.pattern.permute.xlu2 %v1627_v1 }
  0x9f   : > { %v1691_v35 = vpop.permute.xlu2 %282  ;;  %v261_v45 = vpop.xlane.xlu1 %260 }
  0xa0   : > { %v255_v36 = vpop.xlane.xlu0 %254  ;;  %v1703_v46 = vmul.f32 0.00390625, %v261_v45  ;;  %v555_v45 = vperm.slane %v1666_v22, 3 }
  0xa1   : > { %651 = vperm.xlu0 %1354, %v646_v34   ;;  %v265_v38 = vmul.f32 0.00390625, %v255_v36  ;;  %v681_v34 = vperm.slane %v1688_v33, 5 }
  0xa3   : > { %v387_v57 = vmul.f32 %v277_v32, %v265_v38 }
  0xa5   : > { %351 = vperm.xlu2 %1350, %v346_v25  }
  0xa7   : > { %v264_v51 = vpop.xlane.xlu1 %263 }
  0xa8   : > { %v258_v43 = vpop.xlane.xlu0 %257  ;;  %v268_v60 = vmul.f32 0.00390625, %v264_v51  ;;  %v604_v51 = vperm.slane %v1676_v27, 2 }
  0xa9   : > { %672 = vperm.xlu0 %1354, %v667_v37   ;;  %v266_v59 = vmul.f32 0.00390625, %v258_v43  ;;  %v744_v43 = vperm.slane %v1699_v42, 6 }
  0xab   : > { %v388_v21 = vmul.f32 %v1691_v35, %v266_v59 }
  0xad   : > { %1352 = vset.pattern.permute.xlu2 %v1631_v2 }
  0xaf   : > { %v302_v39 = vpop.permute.xlu2 %301 }
  0xb0   : > { %v391_v40 = vmul.f32 %v302_v39, %v265_v38 }
  0xb1   : > { %693 = vperm.xlu0 %1354, %v688_v41   ;;  %v723_v41 = vperm.slane %v1699_v42, 3 }
  0xb2   : > { %432 = vperm.xlu1 %1356, %v391_v40  }
  0xb5   : > { %363 = vperm.xlu2 %1352, %v346_v25  }
  0xb9   : > { %714 = vperm.xlu0 %1354, %v709_v44  }
  0xbb   : > { %v289_v47 = vpop.permute.xlu0 %288 }
  0xbc   : > { %v389_v48 = vmul.f32 %v289_v47, %v1703_v46  ;;  %v569_v47 = vperm.slane %v1666_v22, 5 }
  0xbd   : > { %1355 = vset.pattern.permute.xlu2 %v1627_v1 }
  0xbe   : > { %426 = vperm.xlu1 %1356, %v389_v48  }
  0xbf   : > { %v308_v53 = vpop.permute.xlu2 %307  ;;  %v295_v55 = vpop.permute.xlu1 %294 }
  0xc0   : > { %v392_v62 = vmul.f32 %v308_v53, %v266_v59  ;;  %v390_v26 = vmul.f32 %v295_v55, %v268_v60 }
  0xc1   : > { %735 = vperm.xlu0 %1354, %v730_v49  }
  0xc5   : > { %539 = vperm.xlu2 %1355, %v534_v50  }
  0xc9   : > { %756 = vperm.xlu0 %1354, %v751_v52  }
  0xcb   : > { %v345_v58 = vpop.permute.xlu0 %344 }
  0xcc   : > { %v398_v10 = vmul.f32 %v345_v58, %v268_v60 }
  0xcd   : > { %546 = vperm.xlu2 %1355, %v541_v54   ;;  %v618_v54 = vperm.slane %v1676_v27, 4 }
  0xcf   : > { %v314_v56 = vpop.permute.xlu2 %313  ;;  %v327_v61 = vpop.permute.xlu1 %326 }
  0xd0   : > { %v395_v7 = vmul.f32 %v327_v61, %v265_v38  ;;  %v393_v30 = vmul.f32 %v314_v56, %v1703_v46 }
  0xd1   : > { %1360 = vset.pattern.permute.xlu0 %v1495_v31 }
  0xd2   : > { %420 = vperm.xlu0 %1360, %v387_v57   ;;  %v632_v57 = vperm.slane %v1676_v27, 6 }
  0xd5   : > { %1357 = vset.pattern.permute.xlu2 %v1495_v31 }
  0xda   : > { %435 = vperm.xlu0 %1360, %v392_v62  }
  0xdb   : > { %v1712_v5 = vpop.permute.xlu0 %521 }
  0xdf   : > { %v320_v63 = vpop.permute.xlu2 %319  ;;  %v339_v6 = vpop.permute.xlu1 %338 }
  0xe0   : > { %v394_v4 = vmul.f32 %v320_v63, %v268_v60  ;;  %v397_v8 = vmul.f32 %v339_v6, %v1703_v46 }
  0xe2   : > { %441 = vperm.xlu1 %1356, %v394_v4   ;;  %444 = vperm.xlu0 %1360, %v395_v7   ;;  %v674_v4 = vperm.slane %v1688_v33, 4 }
  0xe3   : > { %v1715_v9 = vpop.permute.xlu0 %553 }
  0xea   : > { %450 = vperm.xlu1 %1356, %v397_v8   ;;  %453 = vperm.xlu0 %1360, %v398_v10   ;;  %v1771_v8 = vand.u32 127, %v272_v0  ;;  %v695_v10 = vperm.slane %v1688_v33, 7 }
  0xeb   : > { %v1717_v11 = vpop.permute.xlu0 %567 }
  0xef   : > { %v358_v12 = vpop.permute.xlu1 %357  ;;  %v333_v13 = vpop.permute.xlu2 %332 }
  0xf0   : > { %v400_v14 = vmul.f32 %v358_v12, %v266_v59  ;;  %v396_v35 = vmul.f32 %v333_v13, %v266_v59  ;;  %v470_v12 = vadd.s32 4294967288, %v1771_v8  ;;  %v474_v13 = vadd.s32 4294967280, %v1771_v8 }
  0xf2   : > { %459 = vperm.xlu1 %1356, %v400_v14  }
  0xf3   : > { %v1719_v15 = vpop.permute.xlu0 %581 }
  0xfa   : > { %1359 = vset.pattern.permute.xlu1 %v1627_v1 }
  0xfb   : > { %v1722_v19 = vpop.permute.xlu0 %602 }
  0xff   : > { %v352_v16 = vpop.permute.xlu2 %351  ;;  %v370_v37 = vpop.permute.xlu1 %369 }
 0x100   : > { %v399_v17 = vmul.f32 %v352_v16, %v265_v38  ;;  %v702_v38 = vperm.slane %v1699_v42, 0  ;;  %v402_v39 = vmul.f32 %v370_v37, %v268_v60  ;;  %v653_v60 = vperm.slane %v1688_v33, 1 }
 0x101   : > { %v716_v33 = vperm.slane %v1699_v42, 2 }
 0x102   : > { %456 = vperm.xlu2 %1357, %v399_v17   ;;  %595 = vperm.xlu1 %1359, %v590_v20   ;;  %v478_v20 = vadd.s32 4294967272, %v1771_v8 }
 0x103   : > { %v1727_v24 = vpop.permute.xlu0 %616 }
 0x10a   : > { %423 = vperm.xlu2 %1357, %v388_v21   ;;  %644 = vperm.xlu1 %1359, %v639_v23  }
 0x10b   : > { %v1732_v32 = vpop.permute.xlu0 %630 }
 0x10f   : > { %v364_v25 = vpop.permute.xlu2 %363 }
 0x110   : > { %v401_v28 = vmul.f32 %v364_v25, %v1703_v46  ;;  %v1749_v46 = vld [vmem:[%s1980_s4] ss:$0 sm:$0xff] }
 0x112   : > { %429 = vperm.xlu2 %1357, %v390_v26   ;;  %462 = vperm.xlu0 %1360, %v401_v28  }
 0x113   : > { %665 = vperm.xlu1 %1359, %v660_v29   ;;  %v1735_v36 = vpop.permute.xlu0 %651 }
 0x11a   : > { %438 = vperm.xlu2 %1357, %v393_v30  }
 0x11b   : > { %686 = vperm.xlu1 %1359, %v681_v34   ;;  %v1738_v40 = vpop.permute.xlu0 %672 }
 0x11f   : > { %v1759_v50 = vpop.permute.xlu2 %539 }
 0x122   : > { %447 = vperm.xlu2 %1357, %v396_v35  }
 0x123   : > { %707 = vperm.xlu1 %1359, %v702_v38   ;;  %v1743_v44 = vpop.permute.xlu0 %693 }
 0x124   : > { %v433_v56 = vpop.permute.xlu1 %432 }
 0x125   : > { %v482_v0 = vperm.slane %v433_v56, %v1771_v8 }
 0x127   : > { %v1764_v53 = vpop.permute.xlu2 %546 }
 0x12a   : > { %465 = vperm.xlu2 %1357, %v402_v39  }
 0x12b   : > { %728 = vperm.xlu1 %1359, %v723_v41   ;;  %v1752_v48 = vpop.permute.xlu0 %714 }
 0x130   : > { %v427_v59 = vpop.permute.xlu1 %426 }
 0x132   : > { %1358 = vset.pattern.permute.xlu2 %v1627_v1  ;;  %v583_v1 = vperm.slane %v1666_v22, 7 }
 0x133   : > { %749 = vperm.xlu1 %1359, %v744_v43   ;;  %v1757_v49 = vpop.permute.xlu0 %735 }
 0x13a   : > { %560 = vperm.xlu2 %1358, %v555_v45  }
 0x13b   : > { %1038 = vperm.xlu1 %1359, %v1749_v46   ;;  %v1762_v52 = vpop.permute.xlu0 %756 }
 0x142   : > { %574 = vperm.xlu2 %1358, %v569_v47   ;;  %v475_v47 = vperm.slane %v427_v59, %v474_v13 }
 0x143   : > { %1362 = vset.pattern.permute.xlu1 %v1495_v31 }
 0x144   : > { %v421_v22 = vpop.permute.xlu0 %420 }
 0x145   : > { %v469_v30 = vperm.slane %v421_v22, %v1771_v8 }
 0x14a   : > { %588 = vperm.xlu2 %1358, %v583_v1  }
 0x14c   : > { %v436_v61 = vpop.permute.xlu0 %435 }
 0x14d   : > { %v483_v14 = vperm.slane %v436_v61, %v470_v12 }
 0x14f   : > { %v484_v34 = vsel %vm472_vm0, %v483_v14, %v482_v0 }
 0x152   : > { %609 = vperm.xlu2 %1358, %v604_v51  }
 0x154   : > { %v442_v63 = vpop.permute.xlu1 %441  ;;  %v445_v6 = vpop.permute.xlu0 %444 }
 0x155   : > { %v489_v21 = vperm.slane %v445_v6, %v1771_v8  ;;  %v487_v37 = vperm.slane %v442_v63, %v478_v20  ;;  %v737_v63 = vperm.slane %v1699_v42, 5 }
 0x15a   : > { %623 = vperm.xlu2 %1358, %v618_v54  }
 0x15c   : > { %v457_v55 = vpop.permute.xlu2 %456  ;;  %v451_v27 = vpop.permute.xlu1 %450 }
 0x15d   : > { %v454_v16 = vpop.permute.xlu0 %453  ;;  %v492_v35 = vperm.slane %v451_v27, %v474_v13  ;;  %v496_v51 = vperm.slane %v457_v55, %v1771_v8 }
 0x15e   : > { %v494_v1 = vperm.slane %v454_v16, %v478_v20 }
 0x162   : > { %637 = vperm.xlu2 %1358, %v632_v57  }
 0x164   : > { %v424_v58 = vpop.permute.xlu2 %423  ;;  %v460_v28 = vpop.permute.xlu1 %459 }
 0x165   : > { %v471_v26 = vperm.slane %v424_v58, %v470_v12  ;;  %v497_v41 = vperm.slane %v460_v28, %v470_v12 }
 0x167   : > { %v473_v39 = vsel %vm472_vm0, %v471_v26, %v469_v30 }
 0x168   : > { %v477_v57 = vsel %vm476_vm1, %v475_v47, %v473_v39 }
 0x16a   : > { %658 = vperm.xlu2 %1358, %v653_v60  }
 0x16c   : > { %v430_v62 = vpop.permute.xlu2 %429 }
 0x16d   : > { %v479_v43 = vperm.slane %v430_v62, %v478_v20  ;;  %v498_v62 = vsel %vm472_vm0, %v497_v41, %v496_v51 }
 0x16f   : > { %v481_v59 = vsel %vm480_vm2, %v479_v43, %v477_v57 }
 0x172   : > { %679 = vperm.xlu2 %1358, %v674_v4  }
 0x174   : > { %v439_v7 = vpop.permute.xlu2 %438 }
 0x175   : > { %v485_v23 = vperm.slane %v439_v7, %v474_v13 }
 0x177   : > { %v486_v38 = vsel %vm476_vm1, %v485_v23, %v484_v34 }
 0x178   : > { %v488_v54 = vsel %vm480_vm2, %v487_v37, %v486_v38 }
 0x179   : > { %v504_v4 = vsel %vm503_vm3, %v488_v54, %v481_v59 }
 0x17a   : > { %700 = vperm.xlu2 %1358, %v695_v10  }
 0x17c   : > { %v448_v17 = vpop.permute.xlu2 %447 }
 0x17d   : > { %v490_v25 = vperm.slane %v448_v17, %v470_v12  ;;  %v596_v12 = vpop.permute.xlu1 %595 }
 0x17f   : > { %v491_v29 = vsel %vm472_vm0, %v490_v25, %v489_v21 }
 0x180   : > { %v493_v45 = vsel %vm476_vm1, %v492_v35, %v491_v29 }
 0x181   : > { %v495_v61 = vsel %vm480_vm2, %v494_v1, %v493_v45 }
 0x182   : > { %721 = vperm.xlu2 %1358, %v716_v33   ;;  %v506_v7 = vsel %vm505_vm4, %v495_v61, %v504_v4 }
 0x184   : > { %v466_v56 = vpop.permute.xlu2 %465  ;;  %v463_v22 = vpop.permute.xlu0 %462 }
 0x185   : > { %v501_v58 = vperm.slane %v466_v56, %v478_v20  ;;  %v499_v60 = vperm.slane %v463_v22, %v474_v13  ;;  %v645_v13 = vpop.permute.xlu1 %644 }
 0x187   : > { %v500_v55 = vsel %vm476_vm1, %v499_v60, %v498_v62 }
 0x188   : > { %v502_v6 = vsel %vm480_vm2, %v501_v58, %v500_v55 }
 0x189   : > { %v508_v10 = vsel %vm507_vm5, %v502_v6, %v506_v7 }
 0x18a   : > { %v511_v27 = vsel %vm510_vm6, %v508_v10, 0.0  ;;  %742 = vperm.xlu2 %1358, %v737_v63  }
 0x18b   : > { %512 = vadd.xlane.f32.xlu1 %v511_v27 }
 0x18d   : > { %v666_v14 = vpop.permute.xlu1 %665 }
 0x192   : > { %1361 = vset.pattern.permute.xlu2 %v1495_v31 }
 0x194   : > { %v561_v17 = vpop.permute.xlu2 %560 }
 0x195   : > { %v1799_v42 = vpop.permute.xlu1 %686 }
 0x19c   : > { %v575_v21 = vpop.permute.xlu2 %574 }
 0x19d   : > { %v708_v16 = vpop.permute.xlu1 %707 }
 0x1a4   : > { %v589_v25 = vpop.permute.xlu2 %588 }
 0x1a5   : > { %v1801_v20 = vpop.permute.xlu1 %728 }
 0x1ac   : > { %v610_v33 = vpop.permute.xlu2 %609 }
 0x1ad   : > { %v1803_v23 = vpop.permute.xlu1 %749 }
 0x1b4   : > { %v624_v37 = vpop.permute.xlu2 %623 }
 0x1b5   : > { %v1805_v0 = vpop.permute.xlu1 %1038 }
 0x1fe   : > { %v513_v26 = vpop.xlane.xlu1 %512 }
 0x1ff   : > { %v524_v28 = vadd.f32 %v1712_v5, %v513_v26 }
 0x201   : > { %v1808_v29 = vmax.f32 %v524_v28, 0.0 }
 0x203   : > { %v790_v30 = vmul.f32 %v1759_v50, %v1808_v29  ;;  %v791_v34 = vmul.f32 %v1764_v53, %v1808_v29  ;;  %v792_v35 = vmul.f32 %v1715_v9, %v1808_v29  ;;  %v797_v38 = vmul.f32 %v589_v25, %v1808_v29  ;;  %v638_v50 = vpop.permute.xlu2 %637 }
 0x204   : > { %v794_v5 = vmul.f32 %v1717_v11, %v1808_v29  ;;  %v793_v39 = vmul.f32 %v561_v17, %v1808_v29  ;;  %v800_v53 = vmul.f32 %v610_v33, %v1808_v29  ;;  %v796_v9 = vmul.f32 %v1719_v15, %v1808_v29 }
 0x205   : > { %861 = vperm.xlu0 %1360, %v792_v35   ;;  %858 = vperm.xlu1 %1362, %v791_v34   ;;  %v795_v41 = vmul.f32 %v575_v21, %v1808_v29  ;;  %v803_v43 = vmul.f32 %v1732_v32, %v1808_v29  ;;  %v799_v11 = vmul.f32 %v1722_v19, %v1808_v29 }
 0x206   : > { %855 = vperm.xlu2 %1361, %v790_v30   ;;  %v798_v47 = vmul.f32 %v596_v12, %v1808_v29  ;;  %v806_v15 = vmul.f32 %v1735_v36, %v1808_v29  ;;  %v802_v1 = vmul.f32 %v624_v37, %v1808_v29  ;;  %v801_v51 = vmul.f32 %v1727_v24, %v1808_v29 }
 0x207   : > { %v814_v19 = vmul.f32 %v708_v16, %v1808_v29  ;;  %v805_v54 = vmul.f32 %v645_v13, %v1808_v29  ;;  %v804_v56 = vmul.f32 %v638_v50, %v1808_v29  ;;  %v809_v36 = vmul.f32 %v1738_v40, %v1808_v29 }
 0x208   : > { %v808_v57 = vmul.f32 %v666_v14, %v1808_v29  ;;  %v818_v60 = vmul.f32 %v1757_v49, %v1808_v29  ;;  %v815_v62 = vmul.f32 %v1752_v48, %v1808_v29  ;;  %v812_v40 = vmul.f32 %v1743_v44, %v1808_v29 }
 0x209   : > { %v817_v63 = vmul.f32 %v1801_v20, %v1808_v29  ;;  %v821_v55 = vmul.f32 %v1762_v52, %v1808_v29  ;;  %v811_v4 = vmul.f32 %v1799_v42, %v1808_v29  ;;  %v820_v6 = vmul.f32 %v1803_v23, %v1808_v29 }
 0x20b   : > { %v659_v45 = vpop.permute.xlu2 %658 }
 0x20c   : > { %v807_v24 = vmul.f32 %v659_v45, %v1808_v29 }
 0x20d   : > { %876 = vperm.xlu0 %1360, %v797_v38   ;;  %867 = vperm.xlu1 %1362, %v794_v5  }
 0x20e   : > { %864 = vperm.xlu2 %1361, %v793_v39  }
 0x213   : > { %v680_v32 = vpop.permute.xlu2 %679 }
 0x214   : > { %v810_v59 = vmul.f32 %v680_v32, %v1808_v29 }
 0x215   : > { %885 = vperm.xlu0 %1360, %v800_v53   ;;  %873 = vperm.xlu1 %1362, %v796_v9  }
 0x216   : > { %870 = vperm.xlu2 %1361, %v795_v41  }
 0x21b   : > { %v701_v22 = vpop.permute.xlu2 %700 }
 0x21c   : > { %v813_v44 = vmul.f32 %v701_v22, %v1808_v29 }
 0x21d   : > { %894 = vperm.xlu0 %1360, %v803_v43   ;;  %882 = vperm.xlu1 %1362, %v799_v11  }
 0x21e   : > { %879 = vperm.xlu2 %1361, %v798_v47  }
 0x223   : > { %v722_v58 = vpop.permute.xlu2 %721 }
 0x224   : > { %v816_v61 = vmul.f32 %v722_v58, %v1808_v29 }
 0x225   : > { %903 = vperm.xlu0 %1360, %v806_v15   ;;  %891 = vperm.xlu1 %1362, %v802_v1  }
 0x226   : > { %888 = vperm.xlu2 %1361, %v801_v51  }
 0x22b   : > { %v743_v49 = vpop.permute.xlu2 %742 }
 0x22c   : > { %v819_v48 = vmul.f32 %v743_v49, %v1808_v29 }
 0x22d   : > { %927 = vperm.xlu0 %1360, %v814_v19   ;;  %900 = vperm.xlu1 %1362, %v805_v54  }
 0x22e   : > { %897 = vperm.xlu2 %1361, %v804_v56  }
 0x235   : > { %912 = vperm.xlu0 %1360, %v809_v36   ;;  %909 = vperm.xlu1 %1362, %v808_v57  }
 0x236   : > { %906 = vperm.xlu2 %1361, %v807_v24  }
 0x23d   : > { %939 = vperm.xlu0 %1360, %v818_v60   ;;  %933 = vperm.xlu1 %1362, %v816_v61  }
 0x23e   : > { %930 = vperm.xlu2 %1361, %v815_v62  }
 0x245   : > { %921 = vperm.xlu0 %1360, %v812_v40   ;;  %915 = vperm.xlu1 %1362, %v810_v59  }
 0x246   : > { %936 = vperm.xlu2 %1361, %v817_v63  }
 0x24d   : > { %948 = vperm.xlu0 %1360, %v821_v55   ;;  %942 = vperm.xlu1 %1362, %v819_v48  }
 0x24e   : > { %918 = vperm.xlu2 %1361, %v811_v4  }
 0x255   : > { %1364 = vset.pattern.permute.xlu0 %v1631_v2  ;;  %924 = vperm.xlu1 %1362, %v813_v44  }
 0x256   : > { %945 = vperm.xlu2 %1361, %v820_v6  }
 0x25d   : > { %1365 = vset.pattern.permute.xlu1 %v1634_v3 }
 0x25e   : > { %1363 = vset.pattern.permute.xlu2 %v1650_v18 }
 0x260   : > { %v856_v52 = vpop.permute.xlu2 %855 }
 0x261   : > { %v950_v42 = vperm.slane %v856_v52, %v1771_v8 }
 0x268   : > { %v865_v7 = vpop.permute.xlu2 %864 }
 0x269   : > { %v953_v23 = vperm.slane %v865_v7, %v1771_v8 }
 0x270   : > { %v871_v10 = vpop.permute.xlu2 %870 }
 0x271   : > { %v955_v28 = vperm.slane %v871_v10, %v1771_v8 }
 0x277   : > { %v862_v27 = vpop.permute.xlu0 %861  ;;  %v859_v12 = vpop.permute.xlu1 %858 }
 0x278   : > { %v880_v13 = vpop.permute.xlu2 %879  ;;  %v951_v14 = vperm.slane %v859_v12, %v1771_v8  ;;  %v952_v16 = vperm.slane %v862_v27, %v1771_v8 }
 0x279   : > { %v958_v41 = vperm.slane %v880_v13, %v1771_v8 }
 0x27a   : > { %v982_v2 = vsel %vm503_vm3, %v951_v14, %v950_v42 }
 0x27b   : > { %v983_v3 = vsel %vm505_vm4, %v952_v16, %v982_v2 }
 0x27c   : > { %v984_v25 = vsel %vm507_vm5, %v953_v23, %v983_v3 }
 0x27f   : > { %v877_v17 = vpop.permute.xlu0 %876  ;;  %v868_v20 = vpop.permute.xlu1 %867 }
 0x280   : > { %v954_v18 = vperm.slane %v868_v20, %v1771_v8  ;;  %v889_v21 = vpop.permute.xlu2 %888  ;;  %v957_v34 = vperm.slane %v877_v17, %v1771_v8 }
 0x281   : > { %v961_v51 = vperm.slane %v889_v21, %v1771_v8 }
 0x282   : > { %v986_v26 = vsel %vm985_vm7, %v954_v18, %v984_v25 }
 0x283   : > { %v988_v35 = vsel %vm987_vm8, %v955_v28, %v986_v26 }
 0x287   : > { %v886_v33 = vpop.permute.xlu0 %885  ;;  %v874_v29 = vpop.permute.xlu1 %873 }
 0x288   : > { %v956_v30 = vperm.slane %v874_v29, %v1771_v8  ;;  %v898_v5 = vpop.permute.xlu2 %897  ;;  %v960_v11 = vperm.slane %v886_v33, %v1771_v8 }
 0x289   : > { %v964_v57 = vperm.slane %v898_v5, %v1771_v8 }
 0x28a   : > { %v990_v37 = vsel %vm989_vm9, %v956_v30, %v988_v35 }
 0x28b   : > { %v992_v38 = vsel %vm991_vm10, %v957_v34, %v990_v37 }
 0x28c   : > { %v1019_v39 = vsel %vm1018_vm11, %v992_v38, 0.0 }
 0x28d   : > { %1020 = vadd.xlane.f32.xlu2 %v1019_v39 }
 0x28f   : > { %v895_v50 = vpop.permute.xlu0 %894  ;;  %v883_v53 = vpop.permute.xlu1 %882 }
 0x290   : > { %v959_v9 = vperm.slane %v883_v53, %v1771_v8  ;;  %v907_v45 = vpop.permute.xlu2 %906  ;;  %v963_v56 = vperm.slane %v895_v50, %v1771_v8 }
 0x291   : > { %v967_v42 = vperm.slane %v907_v45, %v1771_v8 }
 0x292   : > { %v993_v43 = vsel %vm503_vm3, %v959_v9, %v958_v41 }
 0x293   : > { %v994_v15 = vsel %vm505_vm4, %v960_v11, %v993_v43 }
 0x294   : > { %v995_v19 = vsel %vm507_vm5, %v961_v51, %v994_v15 }
 0x297   : > { %v904_v47 = vpop.permute.xlu0 %903  ;;  %v892_v1 = vpop.permute.xlu1 %891 }
 0x298   : > { %v962_v32 = vperm.slane %v892_v1, %v1771_v8  ;;  %v931_v58 = vpop.permute.xlu2 %930  ;;  %v966_v27 = vperm.slane %v904_v47, %v1771_v8 }
 0x299   : > { %v975_v10 = vperm.slane %v931_v58, %v1771_v8 }
 0x29a   : > { %v996_v54 = vsel %vm985_vm7, %v962_v32, %v995_v19  ;;  %v1000_v17 = vsel %vm503_vm3, %v967_v42, %v966_v27 }
 0x29b   : > { %v997_v36 = vsel %vm987_vm8, %v963_v56, %v996_v54 }
 0x29c   : > { %v998_v61 = vsel %vm989_vm9, %v964_v57, %v997_v36 }
 0x29f   : > { %v928_v22 = vpop.permute.xlu0 %927  ;;  %v901_v24 = vpop.permute.xlu1 %900 }
 0x2a0   : > { %v965_v60 = vperm.slane %v901_v24, %v1771_v8  ;;  %v937_v49 = vpop.permute.xlu2 %936  ;;  %v974_v44 = vperm.slane %v928_v22, %v1771_v8 }
 0x2a1   : > { %v977_v16 = vperm.slane %v937_v49, %v1771_v8 }
 0x2a2   : > { %v999_v62 = vsel %vm991_vm10, %v965_v60, %v998_v61  ;;  %v1007_v12 = vsel %vm503_vm3, %v975_v10, %v974_v44 }
 0x2a3   : > { %v1022_v40 = vsel %vm1018_vm11, %v999_v62, 0.0 }
 0x2a4   : > { %1023 = vadd.xlane.f32.xlu1 %v1022_v40 }
 0x2a7   : > { %v913_v59 = vpop.permute.xlu0 %912  ;;  %v910_v63 = vpop.permute.xlu1 %909 }
 0x2a8   : > { %v919_v4 = vpop.permute.xlu2 %918  ;;  %v968_v13 = vperm.slane %v910_v63, %v1771_v8  ;;  %v969_v2 = vperm.slane %v913_v59, %v1771_v8 }
 0x2a9   : > { %v971_v5 = vperm.slane %v919_v4, %v1771_v8 }
 0x2aa   : > { %v1001_v18 = vsel %vm505_vm4, %v968_v13, %v1000_v17 }
 0x2ab   : > { %v1002_v30 = vsel %vm507_vm5, %v969_v2, %v1001_v18 }
 0x2af   : > { %v940_v55 = vpop.permute.xlu0 %939  ;;  %v934_v48 = vpop.permute.xlu1 %933 }
 0x2b0   : > { %v976_v52 = vperm.slane %v934_v48, %v1771_v8  ;;  %v946_v3 = vpop.permute.xlu2 %945  ;;  %v978_v21 = vperm.slane %v940_v55, %v1771_v8 }
 0x2b1   : > { %v980_v28 = vperm.slane %v946_v3, %v1771_v8 }
 0x2b2   : > { %v1008_v14 = vsel %vm505_vm4, %v976_v52, %v1007_v12 }
 0x2b3   : > { %v1009_v20 = vsel %vm507_vm5, %v977_v16, %v1008_v14 }
 0x2b4   : > { %v1010_v29 = vsel %vm985_vm7, %v978_v21, %v1009_v20 }
 0x2b7   : > { %v922_v6 = vpop.permute.xlu0 %921  ;;  %v916_v7 = vpop.permute.xlu1 %915 }
 0x2b8   : > { %v970_v23 = vperm.slane %v916_v7, %v1771_v8  ;;  %v972_v9 = vperm.slane %v922_v6, %v1771_v8 }
 0x2ba   : > { %v1003_v37 = vsel %vm985_vm7, %v970_v23, %v1002_v30 }
 0x2bb   : > { %v1004_v53 = vsel %vm987_vm8, %v971_v5, %v1003_v37 }
 0x2bc   : > { %v1005_v11 = vsel %vm989_vm9, %v972_v9, %v1004_v53 }
 0x2bd   : > { %1056 = vperm.xlu1 %1365, %v1749_v46  }
 0x2bf   : > { %v949_v25 = vpop.permute.xlu0 %948  ;;  %v943_v26 = vpop.permute.xlu1 %942 }
 0x2c0   : > { %v979_v33 = vperm.slane %v943_v26, %v1771_v8  ;;  %v981_v34 = vperm.slane %v949_v25, %v1771_v8 }
 0x2c2   : > { %v1011_v35 = vsel %vm987_vm8, %v979_v33, %v1010_v29 }
 0x2c3   : > { %v1012_v38 = vsel %vm989_vm9, %v980_v28, %v1011_v35 }
 0x2c4   : > { %v1013_v39 = vsel %vm991_vm10, %v981_v34, %v1012_v38 }
 0x2c5   : > { %v1028_v50 = vsel %vm1018_vm11, %v1013_v39, 0.0  ;;  %1367 = vset.pattern.permute.xlu1 %v1495_v31 }
 0x2c6   : > { %1029 = vadd.xlane.f32.xlu2 %v1028_v50 }
 0x2c7   : > { %v925_v41 = vpop.permute.xlu1 %924 }
 0x2c8   : > { %v973_v43 = vperm.slane %v925_v41, %v1771_v8 }
 0x2ca   : > { %v1006_v45 = vsel %vm991_vm10, %v973_v43, %v1005_v11 }
 0x2cb   : > { %v1025_v47 = vsel %vm1018_vm11, %v1006_v45, 0.0 }
 0x2cc   : > { %1026 = vadd.xlane.f32.xlu0 %v1025_v47 }
 0x2de   : > { %1044 = vperm.xlu2 %1363, %v1749_v46  }
 0x2e0   : > { %1050 = vperm.xlu0 %1364, %v1749_v46  }
 0x2e6   : > { %1366 = vset.pattern.permute.xlu2 %v1495_v31 }
 0x2e8   : > { %1368 = vset.pattern.permute.xlu0 %v1495_v31 }
 0x300   : > { %v1021_v15 = vpop.xlane.xlu2 %1020 }
 0x301   : > { %v1062_v1 = vadd.f32 %v1805_v0, %v1021_v15  ;;  %v1387_v15 = vld [vmem:[%s1620_s25] sm:$0xff] }
 0x303   : > { %v1276_v51 = vmul.f32 -1.442695, %v1062_v1 }
 0x305   : > { %1371 = vpow2.f32 %v1276_v51  ;;  %v1388_v51 = vld [vmem:[%s1620_s25 + $0x8] sm:$0xff] }
 0x30b   : > { %v1372_v8 = vpop.eup %1371 }
 0x30c   : > { %v1078_v32 = vadd.f32 1.0, %v1372_v8 }
 0x30e   : > { %1373 = vrcp.f32 %v1078_v32  ;;  %v1093_v22 = vand.u32 2147483648, %v1078_v32  ;;  %v1091_v57 = vand.u32 2147483647, %v1078_v32  ;;  %vm1087_vm13 = vweird.f32 %v1078_v32 }
 0x310   : > { %v1094_v24 = vor.u32 1.1754944e-38, %v1093_v22  ;;  %vm1092_vm15 = vcmp.eq.f32.partialorder %v1091_v57, 8.507059e+37  ;;  %v1391_v57 = vld [vmem:[%s1620_s25 + $0x10] sm:$0xff] }
 0x314   : > { %v1374_v19 = vpop.eup %1373 }
 0x315   : > { %v1083_v54 = vmul.f32 %v1374_v19, %v1078_v32  ;;  %vm1088_vm12 = vweird.f32 %v1374_v19 }
 0x316   : > { %vm1089_vm14 = vmor %vm1087_vm13, %vm1088_vm12 }
 0x317   : > { %v1084_v56 = vsub.f32 1.0, %v1083_v54  ;;  %v1024_v0 = vpop.xlane.xlu1 %1023 }
 0x319   : > { %v1085_v36 = vmul.f32 %v1374_v19, %v1084_v56  ;;  %v1390_v56 = vld [vmem:[%s1620_s25 + $0x28] sm:$0xff] }
 0x31b   : > { %v1086_v46 = vadd.f32 %v1374_v19, %v1085_v36 }
 0x31d   : > { %v1090_v31 = vsel %vm1089_vm14, %v1374_v19, %v1086_v46  ;;  %v1389_v19 = vld [vmem:[%s1620_s25 + $0x20] sm:$0xff] }
 0x31e   : > { %v1095_v58 = vsel %vm1092_vm15, %v1094_v24, %v1090_v31  ;;  %v1392_v24 = vld [vmem:[%s1620_s25 + $0x18] sm:$0xff] }
 0x31f   : > { %1144 = vperm.xlu2 %1366, %v1095_v58  }
 0x32f   : > { %v1057_v60 = vpop.permute.xlu1 %1056 }
 0x339   : > { %v1030_v61 = vpop.xlane.xlu2 %1029 }
 0x33a   : > { %v1065_v62 = vadd.f32 %v1057_v60, %v1030_v61  ;;  %v1394_v61 = vld [vmem:[%s1620_s25 + $0x38] sm:$0xff] }
 0x33c   : > { %v1279_v40 = vmul.f32 -1.442695, %v1065_v62 }
 0x33e   : > { %1375 = vpow2.f32 %v1279_v40 }
 0x33f   : > { %v1027_v4 = vpop.xlane.xlu0 %1026 }
 0x341   : > { %v1045_v59 = vpop.permute.xlu2 %1044 }
 0x342   : > { %v1063_v63 = vadd.f32 %v1045_v59, %v1024_v0  ;;  %v1393_v0 = vld [vmem:[%s1620_s25 + $0x30] sm:$0xff] }
 0x344   : > { %v1376_v49 = vpop.eup %1375  ;;  %v1277_v55 = vmul.f32 -1.442695, %v1063_v63 }
 0x345   : > { %v1081_v48 = vadd.f32 1.0, %v1376_v49 }
 0x346   : > { %1377 = vpow2.f32 %v1277_v55 }
 0x347   : > { %1379 = vrcp.f32 %v1081_v48  ;;  %v1138_v29 = vand.u32 2147483648, %v1081_v48  ;;  %vm1132_vm5 = vweird.f32 %v1081_v48  ;;  %v1136_v30 = vand.u32 2147483647, %v1081_v48 }
 0x349   : > { %v1139_v35 = vor.u32 1.1754944e-38, %v1138_v29  ;;  %vm1137_vm7 = vcmp.eq.f32.partialorder %v1136_v30, 8.507059e+37 }
 0x34c   : > { %v1378_v44 = vpop.eup %1377 }
 0x34d   : > { %v1079_v6 = vadd.f32 1.0, %v1378_v44  ;;  %v1380_v52 = vpop.eup %1379 }
 0x34e   : > { %v1128_v27 = vmul.f32 %v1380_v52, %v1081_v48  ;;  %vm1133_vm4 = vweird.f32 %v1380_v52 }
 0x34f   : > { %1381 = vrcp.f32 %v1079_v6  ;;  %v1108_v17 = vand.u32 2147483648, %v1079_v6  ;;  %v1106_v20 = vand.u32 2147483647, %v1079_v6  ;;  %vm1102_vm1 = vweird.f32 %v1079_v6  ;;  %vm1134_vm6 = vmor %vm1132_vm5, %vm1133_vm4 }
 0x350   : > { %v1129_v16 = vsub.f32 1.0, %v1128_v27 }
 0x351   : > { %v1109_v23 = vor.u32 1.1754944e-38, %v1108_v17  ;;  %vm1107_vm3 = vcmp.eq.f32.partialorder %v1106_v20, 8.507059e+37 }
 0x352   : > { %v1051_v7 = vpop.permute.xlu0 %1050  ;;  %v1130_v18 = vmul.f32 %v1380_v52, %v1129_v16 }
 0x353   : > { %v1064_v10 = vadd.f32 %v1051_v7, %v1027_v4 }
 0x354   : > { %v1131_v28 = vadd.f32 %v1380_v52, %v1130_v18 }
 0x355   : > { %v1382_v12 = vpop.eup %1381  ;;  %v1278_v13 = vmul.f32 -1.442695, %v1064_v10 }
 0x356   : > { %v1098_v14 = vmul.f32 %v1382_v12, %v1079_v6  ;;  %vm1103_vm0 = vweird.f32 %v1382_v12  ;;  %v1135_v34 = vsel %vm1134_vm6, %v1380_v52, %v1131_v28 }
 0x357   : > { %1383 = vpow2.f32 %v1278_v13  ;;  %vm1104_vm2 = vmor %vm1102_vm1, %vm1103_vm0  ;;  %v1140_v38 = vsel %vm1137_vm7, %v1139_v35, %v1135_v34 }
 0x358   : > { %v1099_v42 = vsub.f32 1.0, %v1098_v14 }
 0x35a   : > { %v1100_v2 = vmul.f32 %v1382_v12, %v1099_v42 }
 0x35c   : > { %v1101_v3 = vadd.f32 %v1382_v12, %v1100_v2 }
 0x35d   : > { %v1384_v21 = vpop.eup %1383 }
 0x35e   : > { %v1080_v25 = vadd.f32 1.0, %v1384_v21  ;;  %v1105_v26 = vsel %vm1104_vm2, %v1382_v12, %v1101_v3 }
 0x35f   : > { %v1110_v33 = vsel %vm1107_vm3, %v1109_v23, %v1105_v26 }
 0x360   : > { %1385 = vrcp.f32 %v1080_v25  ;;  %1149 = vperm.xlu1 %1367, %v1110_v33   ;;  %v1123_v50 = vand.u32 2147483648, %v1080_v25  ;;  %v1121_v9 = vand.u32 2147483647, %v1080_v25  ;;  %vm1117_vm9 = vweird.f32 %v1080_v25 }
 0x362   : > { %v1124_v43 = vor.u32 1.1754944e-38, %v1123_v50  ;;  %vm1122_vm11 = vcmp.eq.f32.partialorder %v1121_v9, 8.507059e+37 }
 0x366   : > { %v1386_v37 = vpop.eup %1385 }
 0x367   : > { %v1113_v5 = vmul.f32 %v1386_v37, %v1080_v25  ;;  %vm1118_vm8 = vweird.f32 %v1386_v37 }
 0x368   : > { %1159 = vperm.xlu1 %1367, %v1140_v38   ;;  %vm1119_vm10 = vmor %vm1117_vm9, %vm1118_vm8 }
 0x369   : > { %v1114_v39 = vsub.f32 1.0, %v1113_v5 }
 0x36b   : > { %v1115_v53 = vmul.f32 %v1386_v37, %v1114_v39 }
 0x36d   : > { %v1116_v41 = vadd.f32 %v1386_v37, %v1115_v53 }
 0x36f   : > { %v1120_v11 = vsel %vm1119_vm10, %v1386_v37, %v1116_v41 }
 0x370   : > { %v1125_v45 = vsel %vm1122_vm11, %v1124_v43, %v1120_v11 }
 0x371   : > { %1154 = vperm.xlu2 %1366, %v1125_v45  }
 0x379   : > { %v1145_v47 = vpop.permute.xlu2 %1144 }
 0x37a   : > { %v1162_v1 = vmul.f32 %v1387_v15, %v1145_v47  ;;  %v1163_v8 = vmul.f32 %v1388_v51, %v1145_v47 }
 0x37c   : > { %1170 = vst [vmem:[%s244_s13] sm:$0xff] %v1162_v1 }
 0x37d   : > { %1171 = vst [vmem:[%s244_s13 + $0x8] sm:$0xff] %v1163_v8 }
 0x3cb   : > { %v1155_v32 = vpop.permute.xlu2 %1154 }
 0x3cc   : > { %v1166_v54 = vmul.f32 %v1389_v19, %v1155_v32  ;;  %v1167_v22 = vmul.f32 %v1390_v56, %v1155_v32 }
 0x3ce   : > { %1174 = vst [vmem:[%s244_s13 + $0x20] sm:$0xff] %v1166_v54 }
 0x3cf   : > { %1175 = vst [vmem:[%s244_s13 + $0x28] sm:$0xff] %v1167_v22 }
 0x3d2   : > { %v1150_v36 = vpop.permute.xlu1 %1149 }
 0x3d3   : > { %v1164_v46 = vmul.f32 %v1391_v57, %v1150_v36  ;;  %v1165_v31 = vmul.f32 %v1392_v24, %v1150_v36 }
 0x3d5   : > { %1172 = vst [vmem:[%s244_s13 + $0x10] sm:$0xff] %v1164_v46 }
 0x3d6   : > { %1173 = vst [vmem:[%s244_s13 + $0x18] sm:$0xff] %v1165_v31 }
 0x3da   : > { %v1160_v58 = vpop.permute.xlu1 %1159 }
 0x3db   : > { %v1168_v60 = vmul.f32 %v1393_v0, %v1160_v58  ;;  %v1169_v62 = vmul.f32 %v1394_v61, %v1160_v58 }
 0x3dd   : > { %1176 = vst [vmem:[%s244_s13 + $0x30] sm:$0xff] %v1168_v60 }
 0x3de   : > { %1177 = vst [vmem:[%s244_s13 + $0x38] sm:$0xff] %v1169_v62 }
 0x3df   : > { %1452 = shalt.err (!%p1449_p4)
}
 0x3e0   : > { %s1496_s12 = smov 256   ;;  %s1497_s25 = smov 16  }
 0x3e1   : > { %1289 = dma.vmem_to_hbm [thread:$0]  (%p1578_p11), %s1192_s26, 1024, %s1194_s8, %s1179_s28, %s1496_s12, %s1496_s12, %s1497_s25  }
 0x3e2 PF: > { %s1208_s13 = sand.u32 1, %s1479_s18   ;;  %p1987_p7 = scmp.ge.s32.totalorder %s1491_s21, 2 }
 0x3e3   : > { %s1209_s15 = scalar_lea.sflag [#allocation4], %s1208_s13 }
 0x3e4   : > { %p1296_p5 = pnand %p1987_p7, %p1582_p12 }
 0x3e6   : > { %p1297_p8 = pneg %p1296_p5 }
 0x3e8   : > { %1474 = dma.done.wait (%p1297_p8), %s1209_s15, 1024  }
 0x3e9   : > { %1476 = vsyncadd (%p1297_p8), %s1209_s15, 4294966272  ;;  %p18_p10 = scmp.ge.s32.totalorder %s1553_s24, 4   ;;  %s1988_s18 = smov %s1483_s19 }
 0x3ea   : > { %s1989_s19 = smov %s1487_s20  ;;  %s1990_s20 = smov %s1565_s27 }
 0x3eb   : > { %s1991_s21 = smov %s1553_s24  ;;  %20 = sbr.rel (!%p18_p10) target bundleno = 5 (0x5), region = 85 }
 0x3f0   :  { %1215 = vsyncpa [#allocation3], 1 }
 0x3f1   :  { %1217 = vsyncpa [#allocation3 + $0x1], 1 }
 0x3f2   :  { %1218 = vsyncpa [#allocation4], 1 }
 0x3f3   :  { %1220 = vsyncpa [#allocation4 + $0x1], 1 }

</bundles_post_ra>
